<compile_context>
chip_gen: v5e
topology: v5e:2x2
jax: 0.10.0
libtpu: 0.0.40
codegen_flags: <defaults>
</compile_context>

<pallas_src>
import jax
import jax.numpy as jnp
from jax.experimental import pallas as pl
from jax.experimental.pallas import tpu as pltpu


_LOG_2PI = 1.8378770664093453  # log(2 * pi)


def model_kernel(covar_ref, rand_ref, mlv_ref, ylg_ref, out_ref, acc_ref):
    t = pl.program_id(1)                   # inner (reduction) axis over T tiles

    n_covar = covar_ref.shape[0]

    mlv = mlv_ref[...]                     # (2, C1)
    mu = mlv[0:1, :]                       # (1, C1)
    logvar = mlv[1:2, :]                   # (1, C1)
    sd = jnp.exp(0.5 * logvar)             # (1, C1)

    beta = rand_ref[...] * sd + mu         # (S, C1)  beta samples

    # sum_beta[s, t] = sum_{c<n_covar} beta[s, c] * covar[c, t] + beta[s, n_covar]
    # (intercept via lane-broadcast of beta's last column; no covar/ones concat)
    sum_beta = jax.lax.dot_general(
        beta[:, :n_covar], covar_ref[...],
        dimension_numbers=(((1,), (0,)), ((), ())),
        preferred_element_type=jnp.float32,
    ) + beta[:, n_covar:]                  # (S, T_TILE)

    rate = 1e-7 + jnp.exp(sum_beta)        # (S, T_TILE)

    ylg = ylg_ref[...]                     # (2, T_TILE)
    y = ylg[0:1, :]                        # (1, T_TILE)
    lg = ylg[1:2, :]                       # (1, T_TILE)  lgamma(y+1), precomputed

    # Full Poisson log-prob (lgamma folded in here instead of a wrapper pass over y).
    ll = y * jnp.log(rate) - rate - lg     # (S, T_TILE)

    @pl.when(t == 0)
    def _():
        acc_ref[...] = jnp.zeros_like(acc_ref)

    acc_ref[...] += jnp.sum(ll, axis=-1, keepdims=True)          # (S, 1)

    @pl.when(t == pl.num_programs(1) - 1)
    def _():
        # Mean over samples of this parallel chunk's log-likelihood partial sum.
        out_ref[...] = jnp.mean(acc_ref[...], axis=0, keepdims=True)[None]   # (1,1,1)


@jax.jit
def model_forward(covar, y, mu, logvar, rand):
    """covar: (n_covar, T), y: (T,), mu/logvar: (n_covar+1,), rand: (n_covar+1, n_sample)."""
    n_covar, T = covar.shape
    c1, n_sample = rand.shape
    assert c1 == n_covar + 1

    covar32 = covar.astype(jnp.float32)                              # (n_covar, T)
    rand_t = rand.astype(jnp.float32).T                              # (S, C1) (fused under jit)
    mlv = jnp.stack(
        [mu.astype(jnp.float32), logvar.astype(jnp.float32)], axis=0)  # (2, C1)
    y32 = y.astype(jnp.float32)
    ylg = jnp.stack([y32, jax.lax.lgamma(y32 + 1.0)], axis=0)        # (2, T)

    # T tiling: single block at small T; 1024-wide tiles (no vreg spill) when T grows.
    t_tile = T if T <= 1024 else 1024
    assert T % t_tile == 0, "T must be a multiple of the tile (and of 128 when tiled)"
    nt_total = T // t_tile

    # v7x: shard the T reduction over a parallel leading axis (2 TensorCores per chip).
    # Harmless on v5e/v6e (single core -> plain outer loop).
    n_par = 2 if (nt_total >= 2 and nt_total % 2 == 0) else 1
    nt = nt_total // n_par

    partials = pl.pallas_call(
        model_kernel,
        out_shape=jax.ShapeDtypeStruct((n_par, 1, 1), jnp.float32),
        grid_spec=pltpu.PrefetchScalarGridSpec(
            num_scalar_prefetch=0,
            grid=(n_par, nt),
            in_specs=[
                pl.BlockSpec((n_covar, t_tile), lambda p, t: (0, p * nt + t)),  # covar tile
                pl.BlockSpec((n_sample, c1), lambda p, t: (0, 0)),              # rand (resident)
                pl.BlockSpec((2, c1), lambda p, t: (0, 0)),                     # mu/logvar
                pl.BlockSpec((2, t_tile), lambda p, t: (0, p * nt + t)),        # y / lgamma tile
            ],
            out_specs=pl.BlockSpec((1, 1, 1), lambda p, t: (p, 0, 0)),
            scratch_shapes=[pltpu.VMEM((n_sample, 1), jnp.float32)],
        ),
        compiler_params=pltpu.CompilerParams(
            dimension_semantics=("parallel", "arbitrary"),   # T is the reduction axis
        ),
    )(covar32, rand_t, mlv, ylg)

    lls_mean = jnp.sum(partials)   # sum of per-chunk (mean over S) LL partials

    # Normal(mu, sd).log_prob(beta) == -0.5*rd^2 - 0.5*logvar - 0.5*log(2*pi)
    # (T-independent; tiny fused reduction, kept out of the kernel epilogue)
    logvar32 = logvar.astype(jnp.float32)
    rd2_mean = jnp.mean(jnp.sum(rand_t * rand_t, axis=1))
    penalty_mean = -0.5 * rd2_mean - 0.5 * jnp.sum(logvar32) - 0.5 * c1 * _LOG_2PI

    return -lls_mean + penalty_mean


def model_forward_ref(covar, y, mu, logvar, rand):
    """Pure-JAX reference mirroring the PyTorch forward loop."""
    n_covar, T = covar.shape
    c1, n_sample = rand.shape
    sum_beta = jnp.zeros((n_sample, T), jnp.float32)
    penalty = jnp.zeros((n_sample, 1), jnp.float32)
    for i in range(c1):
        sd = jnp.exp(0.5 * logvar[i])
        rd = rand[i].reshape(n_sample, 1)
        beta = rd * sd + mu[i]
        if i == n_covar:
            sum_beta = sum_beta + beta
        else:
            sum_beta = sum_beta + beta * covar[i]
        logp = -((beta - mu[i]) ** 2) / (2.0 * sd * sd) - jnp.log(sd) - 0.5 * _LOG_2PI
        penalty = penalty + logp
    rate = 1e-7 + jnp.exp(sum_beta)
    lls = jnp.sum(y * jnp.log(rate) - rate - jax.lax.lgamma(y + 1.0), axis=-1)
    return -jnp.mean(lls) + jnp.mean(penalty)


if __name__ == "__main__":
    n_covar = 7      # -> n_covar + 1 = 8 coefficients
    n_sample = 8
    T = 128          # len(y)

    key = jax.random.PRNGKey(0)
    k_cov, k_y, k_rand = jax.random.split(key, 3)

    covar = 0.1 * jax.random.normal(k_cov, (n_covar, T), jnp.float32)
    y = jax.random.randint(k_y, (T,), 0, 5).astype(jnp.float32)

    # nn.Parameter(torch.zeros(n_covar + 1)) equivalents.
    mu = jnp.zeros((n_covar + 1,), jnp.float32)
    logvar = jnp.zeros((n_covar + 1,), jnp.float32)

    # Deterministic replacement for torch.randn((n_covar+1, n_sample, 1)) (squeezed).
    rand = jax.random.normal(k_rand, (n_covar + 1, n_sample), jnp.float32)

    out = model_forward(covar, y, mu, logvar, rand)
    jax.block_until_ready(out)

    ref = model_forward_ref(covar, y, mu, logvar, rand)
    assert jnp.allclose(out, ref, rtol=1e-5, atol=1e-4), (out, ref)

    print("KERNEL_OK")
</pallas_src>

<mosaic_0001>
module attributes {stable_mosaic.version = 11 : i64} {
  func.func @model_kernel(%arg0: i32, %arg1: i32, %arg2: memref<7x128xf32, #tpu.memory_space<vmem>>, %arg3: memref<8x8xf32, #tpu.memory_space<vmem>>, %arg4: memref<2x8xf32, #tpu.memory_space<vmem>>, %arg5: memref<2x128xf32, #tpu.memory_space<vmem>>, %arg6: memref<1x1x1xf32, #tpu.memory_space<vmem>>, %arg7: memref<8x1xf32, #tpu.memory_space<vmem>>) attributes {dimension_semantics = [#tpu.dimension_semantics<parallel>, #tpu.dimension_semantics<arbitrary>], iteration_bounds = array<i64: 1, 1>, scalar_prefetch = 0 : i64, scratch_operands = 1 : i64, tpu.core_type = #tpu.core_type<tc>, window_params = [{transform_indices = @transform_0, window_bounds = array<i64: 7, 128>}, {pipeline_mode = #tpu.pipeline_mode<synchronous>, transform_indices = @transform_1, window_bounds = array<i64: 8, 8>}, {pipeline_mode = #tpu.pipeline_mode<synchronous>, transform_indices = @transform_2, window_bounds = array<i64: 2, 8>}, {transform_indices = @transform_3, window_bounds = array<i64: 2, 128>}, {transform_indices = @transform_4, window_bounds = array<i64: 1, 1, 1>}]} {
    %c0 = arith.constant 0 : index
    %c0_0 = arith.constant 0 : index
    %0 = vector.load %arg4[%c0, %c0_0] : memref<2x8xf32, #tpu.memory_space<vmem>>, vector<2x8xf32>
    %1 = vector.extract_strided_slice %0 {offsets = [0, 0], sizes = [1, 8], strides = [1, 1]} : vector<2x8xf32> to vector<1x8xf32>
    %2 = vector.extract_strided_slice %0 {offsets = [1, 0], sizes = [1, 8], strides = [1, 1]} : vector<2x8xf32> to vector<1x8xf32>
    %cst = arith.constant 5.000000e-01 : f32
    %3 = vector.broadcast %cst : f32 to vector<1x8xf32>
    %4 = arith.mulf %3, %2 : vector<1x8xf32>
    %5 = math.exp %4 : vector<1x8xf32>
    %c0_1 = arith.constant 0 : index
    %c0_2 = arith.constant 0 : index
    %6 = vector.load %arg3[%c0_1, %c0_2] : memref<8x8xf32, #tpu.memory_space<vmem>>, vector<8x8xf32>
    %7 = vector.broadcast %5 : vector<1x8xf32> to vector<8x8xf32>
    %8 = arith.mulf %6, %7 : vector<8x8xf32>
    %9 = vector.broadcast %1 : vector<1x8xf32> to vector<8x8xf32>
    %10 = arith.addf %8, %9 : vector<8x8xf32>
    %11 = vector.extract_strided_slice %10 {offsets = [0, 0], sizes = [8, 7], strides = [1, 1]} : vector<8x8xf32> to vector<8x7xf32>
    %c0_3 = arith.constant 0 : index
    %c0_4 = arith.constant 0 : index
    %12 = vector.load %arg2[%c0_3, %c0_4] : memref<7x128xf32, #tpu.memory_space<vmem>>, vector<7x128xf32>
    %cst_5 = arith.constant dense<0.000000e+00> : vector<8x128xf32>
    %13 = tpu.matmul %11, %12, %cst_5 {dimension_numbers = #tpu.dot_dimension_numbers<[1], [0], [0], [1], [0, 0, 1, 1], [], []>} : vector<8x7xf32>, vector<7x128xf32>, vector<8x128xf32> -> vector<8x128xf32>
    %14 = vector.extract_strided_slice %10 {offsets = [0, 7], sizes = [8, 1], strides = [1, 1]} : vector<8x8xf32> to vector<8x1xf32>
    %15 = vector.broadcast %14 : vector<8x1xf32> to vector<8x128xf32>
    %16 = arith.addf %13, %15 : vector<8x128xf32>
    %17 = math.exp %16 : vector<8x128xf32>
    %cst_6 = arith.constant 1.000000e-07 : f32
    %18 = vector.broadcast %cst_6 : f32 to vector<8x128xf32>
    %19 = arith.addf %18, %17 : vector<8x128xf32>
    %c0_7 = arith.constant 0 : index
    %c0_8 = arith.constant 0 : index
    %20 = vector.load %arg5[%c0_7, %c0_8] : memref<2x128xf32, #tpu.memory_space<vmem>>, vector<2x128xf32>
    %21 = vector.extract_strided_slice %20 {offsets = [0, 0], sizes = [1, 128], strides = [1, 1]} : vector<2x128xf32> to vector<1x128xf32>
    %22 = vector.extract_strided_slice %20 {offsets = [1, 0], sizes = [1, 128], strides = [1, 1]} : vector<2x128xf32> to vector<1x128xf32>
    %23 = math.log %19 : vector<8x128xf32>
    %24 = vector.broadcast %21 : vector<1x128xf32> to vector<8x128xf32>
    %25 = arith.mulf %24, %23 : vector<8x128xf32>
    %26 = arith.subf %25, %19 : vector<8x128xf32>
    %27 = vector.broadcast %22 : vector<1x128xf32> to vector<8x128xf32>
    %28 = arith.subf %26, %27 : vector<8x128xf32>
    %c0_i32 = arith.constant 0 : i32
    %29 = arith.cmpi eq, %arg1, %c0_i32 : i32
    %30 = arith.extui %29 : i1 to i32
    %c0_i32_9 = arith.constant 0 : i32
    %31 = arith.cmpi ne, %30, %c0_i32_9 : i32
    scf.if %31 {
      %cst_17 = arith.constant 0.000000e+00 : f32
      %40 = vector.broadcast %cst_17 : f32 to vector<8x1xf32>
      %c0_18 = arith.constant 0 : index
      %c0_19 = arith.constant 0 : index
      %41 = vector.load %arg7[%c0_18, %c0_19] : memref<8x1xf32, #tpu.memory_space<vmem>>, vector<8x1xf32>
      tpu.vector_store %arg7[%c0_18, %c0_19], %40 {strides = array<i32>} : memref<8x1xf32, #tpu.memory_space<vmem>>, vector<8x1xf32>,
    } else {
    }
    %c0_10 = arith.constant 0 : index
    %c0_11 = arith.constant 0 : index
    %32 = vector.load %arg7[%c0_10, %c0_11] : memref<8x1xf32, #tpu.memory_space<vmem>>, vector<8x1xf32>
    %cst_12 = arith.constant dense<0.000000e+00> : vector<8xf32>
    %33 = vector.multi_reduction <add>, %28, %cst_12 [1] : vector<8x128xf32> to vector<8xf32>
    %34 = vector.shape_cast %33 : vector<8xf32> to vector<8x1xf32>
    %35 = arith.addf %32, %34 : vector<8x1xf32>
    %c0_13 = arith.constant 0 : index
    %c0_14 = arith.constant 0 : index
    %36 = vector.load %arg7[%c0_13, %c0_14] : memref<8x1xf32, #tpu.memory_space<vmem>>, vector<8x1xf32>
    tpu.vector_store %arg7[%c0_13, %c0_14], %35 {strides = array<i32>} : memref<8x1xf32, #tpu.memory_space<vmem>>, vector<8x1xf32>,
    %c0_i32_15 = arith.constant 0 : i32
    %37 = arith.cmpi eq, %arg1, %c0_i32_15 : i32
    %38 = arith.extui %37 : i1 to i32
    %c0_i32_16 = arith.constant 0 : i32
    %39 = arith.cmpi ne, %38, %c0_i32_16 : i32
    scf.if %39 {
      %c0_17 = arith.constant 0 : index
      %c0_18 = arith.constant 0 : index
      %40 = vector.load %arg7[%c0_17, %c0_18] : memref<8x1xf32, #tpu.memory_space<vmem>>, vector<8x1xf32>
      %cst_19 = arith.constant dense<0.000000e+00> : vector<1xf32>
      %41 = vector.multi_reduction <add>, %40, %cst_19 [0] : vector<8x1xf32> to vector<1xf32>
      %42 = vector.shape_cast %41 : vector<1xf32> to vector<1x1xf32>
      %cst_20 = arith.constant 8.000000e+00 : f32
      %43 = vector.broadcast %cst_20 : f32 to vector<1x1xf32>
      %44 = arith.divf %42, %43 : vector<1x1xf32>
      %45 = vector.shape_cast %44 : vector<1x1xf32> to vector<1x1x1xf32>
      %c0_21 = arith.constant 0 : index
      %c0_22 = arith.constant 0 : index
      %c0_23 = arith.constant 0 : index
      %46 = vector.load %arg6[%c0_21, %c0_22, %c0_23] : memref<1x1x1xf32, #tpu.memory_space<vmem>>, vector<1x1x1xf32>
      tpu.vector_store %arg6[%c0_21, %c0_22, %c0_23], %45 {strides = array<i32>} : memref<1x1x1xf32, #tpu.memory_space<vmem>>, vector<1x1x1xf32>,
    } else {
    }
    return
  }
  func.func @transform_0(%arg0: i32, %arg1: i32) -> (i32, i32) {
    %c1_i32 = arith.constant 1 : i32
    %0 = arith.muli %arg0, %c1_i32 : i32
    %1 = arith.addi %0, %arg1 : i32
    %c0_i32 = arith.constant 0 : i32
    %c0_i32_0 = arith.constant 0 : i32
    return %c0_i32, %1 : i32, i32
  }
  func.func @transform_1(%arg0: i32, %arg1: i32) -> (i32, i32) {
    %c0_i32 = arith.constant 0 : i32
    %c0_i32_0 = arith.constant 0 : i32
    %c0_i32_1 = arith.constant 0 : i32
    return %c0_i32, %c0_i32_0 : i32, i32
  }
  func.func @transform_2(%arg0: i32, %arg1: i32) -> (i32, i32) {
    %c0_i32 = arith.constant 0 : i32
    %c0_i32_0 = arith.constant 0 : i32
    %c0_i32_1 = arith.constant 0 : i32
    return %c0_i32, %c0_i32_0 : i32, i32
  }
  func.func @transform_3(%arg0: i32, %arg1: i32) -> (i32, i32) {
    %c1_i32 = arith.constant 1 : i32
    %0 = arith.muli %arg0, %c1_i32 : i32
    %1 = arith.addi %0, %arg1 : i32
    %c0_i32 = arith.constant 0 : i32
    %c0_i32_0 = arith.constant 0 : i32
    return %c0_i32, %1 : i32, i32
  }
  func.func @transform_4(%arg0: i32, %arg1: i32) -> (i32, i32, i32) {
    %c0_i32 = arith.constant 0 : i32
    %c0_i32_0 = arith.constant 0 : i32
    %c0_i32_1 = arith.constant 0 : i32
    return %arg0, %c0_i32, %c0_i32_0 : i32, i32, i32
  }
}

</mosaic_0001>

<bundles_post_ra>
// kernel: model_forward.1
= control target key start
LH: loop header
LB: loop body
LE: loop exit
PB: predicated region body
PF: predicated region fallthrough
CT: control target
= control target key end

     0   :  { %vm70_vm0 = vcmask 1046528   ;;  %s254_s0 = inlined_call_operand.vmem [shape: f32[7,128], index: 0, kind: input, shape index: {}]   ;;  %s255_s1 = inlined_call_operand.vmem [shape: f32[8,8], index: 1, kind: input, shape index: {}]   ;;  %s256_s2 = inlined_call_operand.vmem [shape: f32[2,8], index: 2, kind: input, shape index: {}]   ;;  %s257_s3 = inlined_call_operand.vmem [shape: f32[2,128], index: 3, kind: input, shape index: {}]   ;;  %s258_s4 = inlined_call_operand.hbm [shape: f32[1,1,1], index: 4, kind: output, shape index: {}]  }
   0x1   :  { %v61_v0 = vld [vmem:[%s254_s0] sm:$0x7f] }
   0x2   :  { %v52_v1 = vld [vmem:[%s256_s2] sm:$0x3]  ;;  %166 = vmatpush.msk.msra.mxu0 %vm70_vm0, %v61_v0 }
   0x3   :  { %v53_v2 = vmul.f32 0.5, %v52_v1 }
   0x4   :  { %9 = vsyncpa [#allocation4], 0  ;;  %v207_v3 = vmov 7   ;;  %v56_v6 = vld [vmem:[%s255_s1] sm:$0xff]  ;;  %v59_v8 = vperm.slane %v52_v1, 0  ;;  %vm67_vm1 = vcmask 56320  }
   0x5   :  { %172 = vset.pattern.permute.xlu0 %v207_v3  ;;  %v54_v4 = vmul.f32 1.442695, %v53_v2  ;;  %vm109_vm2 = vcmask 7168   ;;  %v208_v12 = vmov 0.0   ;;  %v97_v18 = vld [vmem:[%s257_s3] sm:$0x3] }
   0x6   :  { %110 = vst.msk [vmem:[#allocation2] sm:$0xff] %vm109_vm2, %v208_v12  ;;  %v100_v19 = vperm.slane %v97_v18, 0  ;;  %v103_v23 = vperm.slane %v97_v18, 1  ;;  %v209_v26 = vmov 8.0   ;;  %s210_s2 = smov [#allocation3]   ;;  %s145_s23 = sshll.u32 %s258_s4, 4  ;;  %s146_s23 = int_to_ptr.hbm [resolvable:$true] %s145_s23 }
   0x7   :  { %173 = vpow2.f32 %v54_v4  ;;  %s143_s3 = sshll.u32 %s210_s2, 4  ;;  %vm136_vm4 = vcmask 0   ;;  %s144_s3 = int_to_ptr.vmem [resolvable:$true] %s143_s3 }
   0xd   :  { %v174_v5 = vpop.eup %173  ;;  %v111_v27 = vld [vmem:[#allocation2] sm:$0xff] }
   0xe   :  { %v57_v7 = vperm.slane %v174_v5, 1 }
  0x10   :  { %v58_v9 = vmul.f32 %v57_v7, %v56_v6 }
  0x12   :  { %v60_v10 = vadd.f32 %v59_v8, %v58_v9 }
  0x14   :  { %167 = vmatmul.msk.f32.vlgmr.msra.gmra.mxu0 %vm67_vm1, %v60_v10  ;;  %64 = vperm.xlu0 %172, %v60_v10  }
  0x86   :  { %v65_v11 = vpop.permute.xlu0 %64 }
  0x91   :  { %v91_v13 = vpop.f32.mrf.mxu0 }
  0x92   :  { %v92_v14 = vadd.f32 %v91_v13, %v65_v11 }
  0x94   :  { %v94_v15 = vmul.f32 1.442695, %v92_v14 }
  0x96   :  { %175 = vpow2.f32 %v94_v15 }
  0x9c   :  { %v176_v16 = vpop.eup %175 }
  0x9d   :  { %v96_v17 = vadd.f32 1e-07, %v176_v16 }
  0x9f   :  { %177 = vlog2.f32 %v96_v17 }
  0xa0   :  { %179 = vrcp.f32 %v209_v26 }
  0xa5   :  { %v178_v20 = vpop.eup %177 }
  0xa6   :  { %v99_v21 = vmul.f32 0.6931472, %v178_v20  ;;  %v180_v30 = vpop.eup %179 }
  0xa7   :  { %v129_v31 = vmul.f32 8.0, %v180_v30  ;;  %vm133_vm3 = vweird.f32 %v180_v30 }
  0xa8   :  { %v101_v22 = vmul.f32 %v100_v19, %v99_v21 }
  0xa9   :  { %v130_v32 = vsub.f32 1.0, %v129_v31 }
  0xaa   :  { %v102_v24 = vsub.f32 %v101_v22, %v96_v17 }
  0xab   :  { %v131_v36 = vmul.f32 %v180_v30, %v130_v32 }
  0xac   :  { %v104_v25 = vsub.f32 %v102_v24, %v103_v23 }
  0xad   :  { %v132_v39 = vadd.f32 %v180_v30, %v131_v36 }
  0xae   :  { %112 = vadd.xlane.f32.xlu0 %v104_v25 }
  0xaf   :  { %v134_v42 = vsel %vm133_vm3, %v180_v30, %v132_v39 }
 0x121   :  { %v113_v28 = vpop.xlane.xlu0 %112 }
 0x122   :  { %v114_v29 = vadd.f32 %v113_v28, %v111_v27 }
 0x124   :  { %116 = vst.msk [vmem:[#allocation2] sm:$0xff] %vm109_vm2, %v114_v29 }
 0x12b   :  { %v120_v33 = vld [vmem:[#allocation2] sm:$0xff] }
 0x12c   :  { %v121_v34 = vsel %vm109_vm2, %v120_v33, 0.0 }
 0x12d   :  { %v122_v35 = vrot.slane %v121_v34, 4 }
 0x12f   :  { %v123_v37 = vadd.f32 %v122_v35, %v121_v34 }
 0x131   :  { %v124_v38 = vrot.slane %v123_v37, 2 }
 0x133   :  { %v125_v40 = vadd.f32 %v124_v38, %v123_v37 }
 0x135   :  { %v126_v41 = vrot.slane %v125_v40, 1 }
 0x137   :  { %v127_v43 = vadd.f32 %v126_v41, %v125_v40 }
 0x139   :  { %v135_v44 = vmul.f32 %v134_v42, %v127_v43 }
 0x13b   :  { %137 = vst.msk [vmem:[#allocation3] sm:$0x1] %vm136_vm4, %v135_v44 }
 0x13c   :  { %148 = dma.vmem_to_hbm [thread:$0]  %s144_s3, 16, %s146_s23, [#allocation4]  }
 0x13d   :  { %205 = dma.done.wait [#allocation4], 16  }
 0x13e   :  { %206 = vsyncadd [#allocation4], 4294967280 }
 0x13f   :  { %153 = vsyncpa [#allocation4], 1 }

</bundles_post_ra>
